<compile_context>
chip_gen: v5e
topology: v5e:2x2
jax: 0.10.0
libtpu: 0.0.40
codegen_flags: <defaults>
</compile_context>

<pallas_src>
import functools

import jax
import jax.numpy as jnp
from jax import lax
from jax.experimental import pallas as pl
from jax.experimental.pallas import tpu as pltpu


def _round_up(a, b):
    return (a + b - 1) // b * b


def _encoder_bn_kernel(x_ref, w1_ref, b1_ref, wm_ref, bm_ref, w8_ref, b8_ref,
                       o_ref, *, n_mid):
    """One M-tile of the fused EncoderBN backbone + log_softmax.

    x_ref : (K0, TM)            bf16  space-to-depth'd input, M on lanes
    w1_ref: (stem, K0)          bf16  first conv as a GEMM (K0 = 4*4*Cin)
    b1_ref: (stem, 1)           f32
    wm_ref: (n_mid, stem, stem) bf16  the six 1x1 conv weights
    bm_ref: (n_mid, stem, 1)    f32
    w8_ref: (vocab, stem)       bf16  final 1x1 conv (no ReLU)
    b8_ref: (vocab, 1)          f32
    o_ref : (vocab, TM)         f32   log-probabilities, M on lanes
    """
    cd = jnp.bfloat16

    # Layer 1: 4x4 / stride-4 conv == a single GEMM over K0 = 16*Cin.
    h = jnp.dot(w1_ref[...].astype(cd), x_ref[...].astype(cd),
                preferred_element_type=jnp.float32)
    h = jnp.maximum(h + b1_ref[...], 0.0)

    # Layers 2..7: 1x1 convs == GEMMs; intermediates stay in VMEM/vregs.
    for i in range(n_mid):
        h = jnp.dot(wm_ref[i].astype(cd), h.astype(cd),
                    preferred_element_type=jnp.float32)
        h = jnp.maximum(h + bm_ref[i], 0.0)

    # Layer 8: 1x1 conv to vocab logits (no ReLU).
    logits = jnp.dot(w8_ref[...].astype(cd), h.astype(cd),
                     preferred_element_type=jnp.float32) + b8_ref[...]

    # log_softmax over the channel (sublane) axis, f32 epilogue.
    m = jnp.max(logits, axis=0, keepdims=True)
    z = logits - m
    lse = jnp.log(jnp.sum(jnp.exp(z), axis=0, keepdims=True))
    o_ref[...] = (z - lse).astype(o_ref.dtype)


def encoder_bn_forward(x_blchw, params, *, block_m=128):
    """EncoderBN.forward: x (B, L, Cin, H, W) -> log-probs (B, L, vocab, OH, OW)."""
    B, L, Cin, H, W = x_blchw.shape
    (w1, b1), mid_layers, (w8, b8) = params
    stem = w1.shape[0]
    vocab = w8.shape[0]
    K = w1.shape[-1]                      # 4; kernel == stride -> non-overlapping
    OH, OW = H // K, W // K
    N = B * L
    M = N * OH * OW
    K0 = Cin * K * K
    n_mid = len(mid_layers)

    # --- wrapper-side layout glue: exact im2col (space-to-depth) for k=s=4,
    # presented as a lane-dense (K0, M) slab with M on the 128-lane axis. ---
    xp = x_blchw.reshape(N, Cin, OH, K, OW, K)
    xp = jnp.transpose(xp, (1, 3, 5, 0, 2, 4))        # (Cin, KH, KW, N, OH, OW)
    x0t = xp.reshape(K0, M).astype(jnp.bfloat16)

    # Pack parameters: bf16 matmul operands, f32 biases as (C, 1) columns.
    w1f = w1.reshape(stem, K0).astype(jnp.bfloat16)
    b1c = b1.reshape(stem, 1).astype(jnp.float32)
    wm = jnp.stack([w.reshape(stem, stem) for w, _ in mid_layers]).astype(jnp.bfloat16)
    bm = jnp.stack([b for _, b in mid_layers]).reshape(n_mid, stem, 1).astype(jnp.float32)
    w8f = w8.reshape(vocab, stem).astype(jnp.bfloat16)
    b8c = b8.reshape(vocab, 1).astype(jnp.float32)

    # --- tiling: tile M in multiples of 128 (lane-dense stores); pad if needed. ---
    tm = _round_up(min(block_m, _round_up(M, 128)), 128)
    m_pad = _round_up(M, tm)
    if m_pad != M:
        x0t = jnp.pad(x0t, ((0, 0), (0, m_pad - M)))
    grid = (m_pad // tm,)

    kernel = functools.partial(_encoder_bn_kernel, n_mid=n_mid)

    out_t = pl.pallas_call(
        kernel,
        out_shape=jax.ShapeDtypeStruct((vocab, m_pad), jnp.float32),
        grid_spec=pltpu.PrefetchScalarGridSpec(
            num_scalar_prefetch=0,
            grid=grid,
            in_specs=[
                # activations: tiled along M
                pl.BlockSpec((K0, tm), lambda i: (0, i)),
                # weights / biases: constant block index -> VMEM-resident
                pl.BlockSpec((stem, K0), lambda i: (0, 0)),
                pl.BlockSpec((stem, 1), lambda i: (0, 0)),
                pl.BlockSpec((n_mid, stem, stem), lambda i: (0, 0, 0)),
                pl.BlockSpec((n_mid, stem, 1), lambda i: (0, 0, 0)),
                pl.BlockSpec((vocab, stem), lambda i: (0, 0)),
                pl.BlockSpec((vocab, 1), lambda i: (0, 0)),
            ],
            out_specs=pl.BlockSpec((vocab, tm), lambda i: (0, i)),
        ),
        compiler_params=pltpu.CompilerParams(
            dimension_semantics=("parallel",),
            vmem_limit_bytes=48 * 1024 * 1024,
        ),
    )(x0t, w1f, b1c, wm, bm, w8f, b8c)

    out = out_t[:, :M].reshape(vocab, N, OH, OW)
    out = jnp.transpose(out, (1, 0, 2, 3))            # (N, vocab, OH, OW)
    return out.reshape(B, L, vocab, OH, OW)


# ---------------- parameter init (PyTorch Conv2d-style uniform) ----------------

def _conv_init(key, cout, cin, k):
    kw_key, kb_key = jax.random.split(key)
    fan_in = cin * k * k
    bound = 1.0 / (fan_in ** 0.5)
    w = jax.random.uniform(kw_key, (cout, cin, k, k), jnp.float32, -bound, bound)
    b = jax.random.uniform(kb_key, (cout,), jnp.float32, -bound, bound)
    return w, b


def init_encoder_bn_params(key, in_channels, stem_channels, vocab_size):
    keys = jax.random.split(key, 8)
    first = _conv_init(keys[0], stem_channels, in_channels, 4)
    mids = [_conv_init(keys[i], stem_channels, stem_channels, 1) for i in range(1, 7)]
    last = _conv_init(keys[7], vocab_size, stem_channels, 1)
    return first, mids, last


# ---------------- pure-XLA reference (PyTorch semantics) ----------------

def _encoder_bn_reference(x_blchw, params):
    B, L, Cin, H, W = x_blchw.shape
    (w1, b1), mids, (w8, b8) = params
    h = x_blchw.reshape(B * L, Cin, H, W)

    def conv(h, w, b, stride):
        y = lax.conv_general_dilated(
            h, w, window_strides=(stride, stride), padding="VALID",
            dimension_numbers=("NCHW", "OIHW", "NCHW"))
        return y + b.reshape(1, -1, 1, 1)

    h = jnp.maximum(conv(h, w1, b1, 4), 0.0)
    for w, b in mids:
        h = jnp.maximum(conv(h, w, b, 1), 0.0)
    h = conv(h, w8, b8, 1)
    h = jax.nn.log_softmax(h, axis=1)
    return h.reshape(B, L, *h.shape[1:])


if __name__ == "__main__":
    key = jax.random.PRNGKey(0)
    kx, kp = jax.random.split(key)

    # B=2, L=8 (seq), in_channels=4, 16x16 spatial, stem=vocab=32.
    B, L, CIN, H, W = 2, 8, 4, 16, 16
    STEM, VOCAB = 32, 32

    x = jax.random.normal(kx, (B, L, CIN, H, W), jnp.float32)
    params = init_encoder_bn_params(kp, CIN, STEM, VOCAB)

    out = encoder_bn_forward(x, params, block_m=128)   # grid = (2,) over M=256
    out = jax.block_until_ready(out)
    assert out.shape == (B, L, VOCAB, H // 4, W // 4)

    ref = _encoder_bn_reference(x, params)
    # bf16 matmul operands (f32 accumulation) vs the all-f32 XLA reference.
    max_err = float(jnp.max(jnp.abs(out - ref)))
    assert jnp.allclose(out, ref, atol=5e-2, rtol=5e-2), max_err
    # log-probs must normalise over the channel axis.
    assert jnp.allclose(jax.nn.logsumexp(out, axis=2), 0.0, atol=1e-4)

    print("KERNEL_OK")
</pallas_src>

<mosaic_0001>
module attributes {stable_mosaic.version = 11 : i64} {
  func.func @_encoder_bn_kernel(%arg0: i32, %arg1: memref<64x128xbf16, #tpu.memory_space<vmem>>, %arg2: memref<32x64xbf16, #tpu.memory_space<vmem>>, %arg3: memref<32x1xf32, #tpu.memory_space<vmem>>, %arg4: memref<6x32x32xbf16, #tpu.memory_space<vmem>>, %arg5: memref<6x32x1xf32, #tpu.memory_space<vmem>>, %arg6: memref<32x32xbf16, #tpu.memory_space<vmem>>, %arg7: memref<32x1xf32, #tpu.memory_space<vmem>>, %arg8: memref<32x128xf32, #tpu.memory_space<vmem>>) attributes {dimension_semantics = [#tpu.dimension_semantics<parallel>], iteration_bounds = array<i64: 2>, scalar_prefetch = 0 : i64, scratch_operands = 0 : i64, tpu.core_type = #tpu.core_type<tc>, window_params = [{transform_indices = @transform_0, window_bounds = array<i64: 64, 128>}, {pipeline_mode = #tpu.pipeline_mode<synchronous>, transform_indices = @transform_1, window_bounds = array<i64: 32, 64>}, {pipeline_mode = #tpu.pipeline_mode<synchronous>, transform_indices = @transform_2, window_bounds = array<i64: 32, 1>}, {pipeline_mode = #tpu.pipeline_mode<synchronous>, transform_indices = @transform_3, window_bounds = array<i64: 6, 32, 32>}, {pipeline_mode = #tpu.pipeline_mode<synchronous>, transform_indices = @transform_4, window_bounds = array<i64: 6, 32, 1>}, {pipeline_mode = #tpu.pipeline_mode<synchronous>, transform_indices = @transform_5, window_bounds = array<i64: 32, 32>}, {pipeline_mode = #tpu.pipeline_mode<synchronous>, transform_indices = @transform_6, window_bounds = array<i64: 32, 1>}, {transform_indices = @transform_7, window_bounds = array<i64: 32, 128>}]} {
    %c0 = arith.constant 0 : index
    %c0_0 = arith.constant 0 : index
    %0 = vector.load %arg2[%c0, %c0_0] : memref<32x64xbf16, #tpu.memory_space<vmem>>, vector<32x64xbf16>
    %c0_1 = arith.constant 0 : index
    %c0_2 = arith.constant 0 : index
    %1 = vector.load %arg1[%c0_1, %c0_2] : memref<64x128xbf16, #tpu.memory_space<vmem>>, vector<64x128xbf16>
    %cst = arith.constant dense<0.000000e+00> : vector<32x128xf32>
    %2 = tpu.matmul %0, %1, %cst {dimension_numbers = #tpu.dot_dimension_numbers<[1], [0], [0], [1], [0, 0, 1, 1], [], []>} : vector<32x64xbf16>, vector<64x128xbf16>, vector<32x128xf32> -> vector<32x128xf32>
    %c0_3 = arith.constant 0 : index
    %c0_4 = arith.constant 0 : index
    %3 = vector.load %arg3[%c0_3, %c0_4] : memref<32x1xf32, #tpu.memory_space<vmem>>, vector<32x1xf32>
    %4 = vector.broadcast %3 : vector<32x1xf32> to vector<32x128xf32>
    %5 = arith.addf %2, %4 : vector<32x128xf32>
    %cst_5 = arith.constant 0.000000e+00 : f32
    %6 = vector.broadcast %cst_5 : f32 to vector<32x128xf32>
    %7 = arith.maximumf %5, %6 : vector<32x128xf32>
    %c0_6 = arith.constant 0 : index
    %c0_7 = arith.constant 0 : index
    %c0_8 = arith.constant 0 : index
    %8 = vector.load %arg4[%c0_6, %c0_7, %c0_8] : memref<6x32x32xbf16, #tpu.memory_space<vmem>>, vector<1x32x32xbf16>
    %9 = vector.shape_cast %8 : vector<1x32x32xbf16> to vector<32x32xbf16>
    %10 = arith.truncf %7 : vector<32x128xf32> to vector<32x128xbf16>
    %cst_9 = arith.constant dense<0.000000e+00> : vector<32x128xf32>
    %11 = tpu.matmul %9, %10, %cst_9 {dimension_numbers = #tpu.dot_dimension_numbers<[1], [0], [0], [1], [0, 0, 1, 1], [], []>} : vector<32x32xbf16>, vector<32x128xbf16>, vector<32x128xf32> -> vector<32x128xf32>
    %c0_10 = arith.constant 0 : index
    %c0_11 = arith.constant 0 : index
    %c0_12 = arith.constant 0 : index
    %12 = vector.load %arg5[%c0_10, %c0_11, %c0_12] : memref<6x32x1xf32, #tpu.memory_space<vmem>>, vector<1x32x1xf32>
    %13 = vector.shape_cast %12 : vector<1x32x1xf32> to vector<32x1xf32>
    %14 = vector.broadcast %13 : vector<32x1xf32> to vector<32x128xf32>
    %15 = arith.addf %11, %14 : vector<32x128xf32>
    %cst_13 = arith.constant 0.000000e+00 : f32
    %16 = vector.broadcast %cst_13 : f32 to vector<32x128xf32>
    %17 = arith.maximumf %15, %16 : vector<32x128xf32>
    %c1 = arith.constant 1 : index
    %c0_14 = arith.constant 0 : index
    %c0_15 = arith.constant 0 : index
    %18 = vector.load %arg4[%c1, %c0_14, %c0_15] : memref<6x32x32xbf16, #tpu.memory_space<vmem>>, vector<1x32x32xbf16>
    %19 = vector.shape_cast %18 : vector<1x32x32xbf16> to vector<32x32xbf16>
    %20 = arith.truncf %17 : vector<32x128xf32> to vector<32x128xbf16>
    %cst_16 = arith.constant dense<0.000000e+00> : vector<32x128xf32>
    %21 = tpu.matmul %19, %20, %cst_16 {dimension_numbers = #tpu.dot_dimension_numbers<[1], [0], [0], [1], [0, 0, 1, 1], [], []>} : vector<32x32xbf16>, vector<32x128xbf16>, vector<32x128xf32> -> vector<32x128xf32>
    %c1_17 = arith.constant 1 : index
    %c0_18 = arith.constant 0 : index
    %c0_19 = arith.constant 0 : index
    %22 = vector.load %arg5[%c1_17, %c0_18, %c0_19] : memref<6x32x1xf32, #tpu.memory_space<vmem>>, vector<1x32x1xf32>
    %23 = vector.shape_cast %22 : vector<1x32x1xf32> to vector<32x1xf32>
    %24 = vector.broadcast %23 : vector<32x1xf32> to vector<32x128xf32>
    %25 = arith.addf %21, %24 : vector<32x128xf32>
    %cst_20 = arith.constant 0.000000e+00 : f32
    %26 = vector.broadcast %cst_20 : f32 to vector<32x128xf32>
    %27 = arith.maximumf %25, %26 : vector<32x128xf32>
    %c2 = arith.constant 2 : index
    %c0_21 = arith.constant 0 : index
    %c0_22 = arith.constant 0 : index
    %28 = vector.load %arg4[%c2, %c0_21, %c0_22] : memref<6x32x32xbf16, #tpu.memory_space<vmem>>, vector<1x32x32xbf16>
    %29 = vector.shape_cast %28 : vector<1x32x32xbf16> to vector<32x32xbf16>
    %30 = arith.truncf %27 : vector<32x128xf32> to vector<32x128xbf16>
    %cst_23 = arith.constant dense<0.000000e+00> : vector<32x128xf32>
    %31 = tpu.matmul %29, %30, %cst_23 {dimension_numbers = #tpu.dot_dimension_numbers<[1], [0], [0], [1], [0, 0, 1, 1], [], []>} : vector<32x32xbf16>, vector<32x128xbf16>, vector<32x128xf32> -> vector<32x128xf32>
    %c2_24 = arith.constant 2 : index
    %c0_25 = arith.constant 0 : index
    %c0_26 = arith.constant 0 : index
    %32 = vector.load %arg5[%c2_24, %c0_25, %c0_26] : memref<6x32x1xf32, #tpu.memory_space<vmem>>, vector<1x32x1xf32>
    %33 = vector.shape_cast %32 : vector<1x32x1xf32> to vector<32x1xf32>
    %34 = vector.broadcast %33 : vector<32x1xf32> to vector<32x128xf32>
    %35 = arith.addf %31, %34 : vector<32x128xf32>
    %cst_27 = arith.constant 0.000000e+00 : f32
    %36 = vector.broadcast %cst_27 : f32 to vector<32x128xf32>
    %37 = arith.maximumf %35, %36 : vector<32x128xf32>
    %c3 = arith.constant 3 : index
    %c0_28 = arith.constant 0 : index
    %c0_29 = arith.constant 0 : index
    %38 = vector.load %arg4[%c3, %c0_28, %c0_29] : memref<6x32x32xbf16, #tpu.memory_space<vmem>>, vector<1x32x32xbf16>
    %39 = vector.shape_cast %38 : vector<1x32x32xbf16> to vector<32x32xbf16>
    %40 = arith.truncf %37 : vector<32x128xf32> to vector<32x128xbf16>
    %cst_30 = arith.constant dense<0.000000e+00> : vector<32x128xf32>
    %41 = tpu.matmul %39, %40, %cst_30 {dimension_numbers = #tpu.dot_dimension_numbers<[1], [0], [0], [1], [0, 0, 1, 1], [], []>} : vector<32x32xbf16>, vector<32x128xbf16>, vector<32x128xf32> -> vector<32x128xf32>
    %c3_31 = arith.constant 3 : index
    %c0_32 = arith.constant 0 : index
    %c0_33 = arith.constant 0 : index
    %42 = vector.load %arg5[%c3_31, %c0_32, %c0_33] : memref<6x32x1xf32, #tpu.memory_space<vmem>>, vector<1x32x1xf32>
    %43 = vector.shape_cast %42 : vector<1x32x1xf32> to vector<32x1xf32>
    %44 = vector.broadcast %43 : vector<32x1xf32> to vector<32x128xf32>
    %45 = arith.addf %41, %44 : vector<32x128xf32>
    %cst_34 = arith.constant 0.000000e+00 : f32
    %46 = vector.broadcast %cst_34 : f32 to vector<32x128xf32>
    %47 = arith.maximumf %45, %46 : vector<32x128xf32>
    %c4 = arith.constant 4 : index
    %c0_35 = arith.constant 0 : index
    %c0_36 = arith.constant 0 : index
    %48 = vector.load %arg4[%c4, %c0_35, %c0_36] : memref<6x32x32xbf16, #tpu.memory_space<vmem>>, vector<1x32x32xbf16>
    %49 = vector.shape_cast %48 : vector<1x32x32xbf16> to vector<32x32xbf16>
    %50 = arith.truncf %47 : vector<32x128xf32> to vector<32x128xbf16>
    %cst_37 = arith.constant dense<0.000000e+00> : vector<32x128xf32>
    %51 = tpu.matmul %49, %50, %cst_37 {dimension_numbers = #tpu.dot_dimension_numbers<[1], [0], [0], [1], [0, 0, 1, 1], [], []>} : vector<32x32xbf16>, vector<32x128xbf16>, vector<32x128xf32> -> vector<32x128xf32>
    %c4_38 = arith.constant 4 : index
    %c0_39 = arith.constant 0 : index
    %c0_40 = arith.constant 0 : index
    %52 = vector.load %arg5[%c4_38, %c0_39, %c0_40] : memref<6x32x1xf32, #tpu.memory_space<vmem>>, vector<1x32x1xf32>
    %53 = vector.shape_cast %52 : vector<1x32x1xf32> to vector<32x1xf32>
    %54 = vector.broadcast %53 : vector<32x1xf32> to vector<32x128xf32>
    %55 = arith.addf %51, %54 : vector<32x128xf32>
    %cst_41 = arith.constant 0.000000e+00 : f32
    %56 = vector.broadcast %cst_41 : f32 to vector<32x128xf32>
    %57 = arith.maximumf %55, %56 : vector<32x128xf32>
    %c5 = arith.constant 5 : index
    %c0_42 = arith.constant 0 : index
    %c0_43 = arith.constant 0 : index
    %58 = vector.load %arg4[%c5, %c0_42, %c0_43] : memref<6x32x32xbf16, #tpu.memory_space<vmem>>, vector<1x32x32xbf16>
    %59 = vector.shape_cast %58 : vector<1x32x32xbf16> to vector<32x32xbf16>
    %60 = arith.truncf %57 : vector<32x128xf32> to vector<32x128xbf16>
    %cst_44 = arith.constant dense<0.000000e+00> : vector<32x128xf32>
    %61 = tpu.matmul %59, %60, %cst_44 {dimension_numbers = #tpu.dot_dimension_numbers<[1], [0], [0], [1], [0, 0, 1, 1], [], []>} : vector<32x32xbf16>, vector<32x128xbf16>, vector<32x128xf32> -> vector<32x128xf32>
    %c5_45 = arith.constant 5 : index
    %c0_46 = arith.constant 0 : index
    %c0_47 = arith.constant 0 : index
    %62 = vector.load %arg5[%c5_45, %c0_46, %c0_47] : memref<6x32x1xf32, #tpu.memory_space<vmem>>, vector<1x32x1xf32>
    %63 = vector.shape_cast %62 : vector<1x32x1xf32> to vector<32x1xf32>
    %64 = vector.broadcast %63 : vector<32x1xf32> to vector<32x128xf32>
    %65 = arith.addf %61, %64 : vector<32x128xf32>
    %cst_48 = arith.constant 0.000000e+00 : f32
    %66 = vector.broadcast %cst_48 : f32 to vector<32x128xf32>
    %67 = arith.maximumf %65, %66 : vector<32x128xf32>
    %c0_49 = arith.constant 0 : index
    %c0_50 = arith.constant 0 : index
    %68 = vector.load %arg6[%c0_49, %c0_50] : memref<32x32xbf16, #tpu.memory_space<vmem>>, vector<32x32xbf16>
    %69 = arith.truncf %67 : vector<32x128xf32> to vector<32x128xbf16>
    %cst_51 = arith.constant dense<0.000000e+00> : vector<32x128xf32>
    %70 = tpu.matmul %68, %69, %cst_51 {dimension_numbers = #tpu.dot_dimension_numbers<[1], [0], [0], [1], [0, 0, 1, 1], [], []>} : vector<32x32xbf16>, vector<32x128xbf16>, vector<32x128xf32> -> vector<32x128xf32>
    %c0_52 = arith.constant 0 : index
    %c0_53 = arith.constant 0 : index
    %71 = vector.load %arg7[%c0_52, %c0_53] : memref<32x1xf32, #tpu.memory_space<vmem>>, vector<32x1xf32>
    %72 = vector.broadcast %71 : vector<32x1xf32> to vector<32x128xf32>
    %73 = arith.addf %70, %72 : vector<32x128xf32>
    %cst_54 = arith.constant dense<0xFF800000> : vector<128xf32>
    %74 = vector.multi_reduction <maximumf>, %73, %cst_54 [0] : vector<32x128xf32> to vector<128xf32>
    %75 = vector.shape_cast %74 : vector<128xf32> to vector<1x128xf32>
    %76 = vector.broadcast %75 : vector<1x128xf32> to vector<32x128xf32>
    %77 = arith.subf %73, %76 : vector<32x128xf32>
    %78 = math.exp %77 : vector<32x128xf32>
    %cst_55 = arith.constant dense<0.000000e+00> : vector<128xf32>
    %79 = vector.multi_reduction <add>, %78, %cst_55 [0] : vector<32x128xf32> to vector<128xf32>
    %80 = vector.shape_cast %79 : vector<128xf32> to vector<1x128xf32>
    %81 = math.log %80 : vector<1x128xf32>
    %82 = vector.broadcast %81 : vector<1x128xf32> to vector<32x128xf32>
    %83 = arith.subf %77, %82 : vector<32x128xf32>
    %c0_56 = arith.constant 0 : index
    %c0_57 = arith.constant 0 : index
    %84 = vector.load %arg8[%c0_56, %c0_57] : memref<32x128xf32, #tpu.memory_space<vmem>>, vector<32x128xf32>
    tpu.vector_store %arg8[%c0_56, %c0_57], %83 {strides = array<i32>} : memref<32x128xf32, #tpu.memory_space<vmem>>, vector<32x128xf32>,
    return
  }
  func.func @transform_0(%arg0: i32) -> (i32, i32) {
    %c0_i32 = arith.constant 0 : i32
    %c0_i32_0 = arith.constant 0 : i32
    return %c0_i32, %arg0 : i32, i32
  }
  func.func @transform_1(%arg0: i32) -> (i32, i32) {
    %c0_i32 = arith.constant 0 : i32
    %c0_i32_0 = arith.constant 0 : i32
    %c0_i32_1 = arith.constant 0 : i32
    return %c0_i32, %c0_i32_0 : i32, i32
  }
  func.func @transform_2(%arg0: i32) -> (i32, i32) {
    %c0_i32 = arith.constant 0 : i32
    %c0_i32_0 = arith.constant 0 : i32
    %c0_i32_1 = arith.constant 0 : i32
    return %c0_i32, %c0_i32_0 : i32, i32
  }
  func.func @transform_3(%arg0: i32) -> (i32, i32, i32) {
    %c0_i32 = arith.constant 0 : i32
    %c0_i32_0 = arith.constant 0 : i32
    %c0_i32_1 = arith.constant 0 : i32
    %c0_i32_2 = arith.constant 0 : i32
    return %c0_i32, %c0_i32_0, %c0_i32_1 : i32, i32, i32
  }
  func.func @transform_4(%arg0: i32) -> (i32, i32, i32) {
    %c0_i32 = arith.constant 0 : i32
    %c0_i32_0 = arith.constant 0 : i32
    %c0_i32_1 = arith.constant 0 : i32
    %c0_i32_2 = arith.constant 0 : i32
    return %c0_i32, %c0_i32_0, %c0_i32_1 : i32, i32, i32
  }
  func.func @transform_5(%arg0: i32) -> (i32, i32) {
    %c0_i32 = arith.constant 0 : i32
    %c0_i32_0 = arith.constant 0 : i32
    %c0_i32_1 = arith.constant 0 : i32
    return %c0_i32, %c0_i32_0 : i32, i32
  }
  func.func @transform_6(%arg0: i32) -> (i32, i32) {
    %c0_i32 = arith.constant 0 : i32
    %c0_i32_0 = arith.constant 0 : i32
    %c0_i32_1 = arith.constant 0 : i32
    return %c0_i32, %c0_i32_0 : i32, i32
  }
  func.func @transform_7(%arg0: i32) -> (i32, i32) {
    %c0_i32 = arith.constant 0 : i32
    %c0_i32_0 = arith.constant 0 : i32
    return %c0_i32, %arg0 : i32, i32
  }
}

</mosaic_0001>

<bundles_post_ra>
// kernel: tpu_custom_call.1
= control target key start
LH: loop header
LB: loop body
LE: loop exit
PB: predicated region body
PF: predicated region fallthrough
CT: control target
= control target key end

     0   :  { %12 = vsyncpa [#allocation4], 0  ;;  %s1653_s0 = inlined_call_operand.vmem [shape: bf16[64,256], index: 0, kind: input, shape index: {}]   ;;  %s1654_s1 = inlined_call_operand.vmem [shape: bf16[32,64], index: 1, kind: input, shape index: {}]   ;;  %s1655_s2 = inlined_call_operand.vmem [shape: f32[32,1], index: 2, kind: input, shape index: {}]   ;;  %s1656_s3 = inlined_call_operand.vmem [shape: bf16[6,32,32], index: 3, kind: input, shape index: {}]   ;;  %s1657_s4 = inlined_call_operand.vmem [shape: f32[6,32,1], index: 4, kind: input, shape index: {}]   ;;  %s1658_s5 = inlined_call_operand.vmem [shape: bf16[32,32], index: 5, kind: input, shape index: {}]   ;;  %s1659_s6 = inlined_call_operand.vmem [shape: f32[32,1], index: 6, kind: input, shape index: {}]   ;;  %s1660_s7 = inlined_call_operand.hbm [shape: f32[32,256], index: 7, kind: output, shape index: {}]  }
   0x1   :  { %14 = vsyncpa [#allocation4 + $0x1], 0  ;;  %s1394_s24 = smov 0   ;;  %s1396_s25 = smov 0  }
   0x2   :  { %s1398_s26 = smov 0   ;;  %s1400_s27 = smov 0  }
   0x3 LB: > { %s1061_s28 = sadd.s32 4294967295, %s1348_s27   ;;  %s1062_s29 = sadd.s32 4294967294, %s1348_s27   ;;  %s1348_s27 = sphi %s1400_s27, %s1666_s27   ;;  %s1344_s26 = sphi %s1398_s26, %s1665_s26   ;;  %s1340_s25 = sphi %s1396_s25, %s1664_s25   ;;  %s1336_s24 = sphi %s1394_s24, %s1663_s24  }
   0x4   : > { %s1417_s30 = sadd.s32 1, %s1348_s27   ;;  %s27_s8 = sadd.s32 1, %s1344_s26 }
   0x5   : > { %s24_s9 = ssub.s32 %s1348_s27, %s1417_s30  ;;  %p34_p0 = scmp.ne.s32.totalorder %s1344_s26, %s1340_s25 }
   0x6   : > { %p25_p1 = scmp.eq.s32.totalorder %s24_s9, 0  ;;  %p35_p2 = scmp.eq.s32.totalorder %s1348_s27, 0 }
   0x7   : > { %p190_p3 = scmp.eq.s32.totalorder %s1061_s28, 1  ;;  %p195_p4 = scmp.ne.s32.totalorder %s1340_s25, %s1336_s24 }
   0x8   : > { %s1430_s10 = scalar_select %p25_p1, %s1344_s26, %s27_s8  }
   0x9   : > { %p36_p5 = por %p35_p2, %p34_p0  ;;  %p1432_p6 = por %p190_p3, %p34_p0 }
   0xa   : > { %p196_p7 = scmp.eq.s32.totalorder %s1062_s29, 1  ;;  %p1064_p9 = scmp.ge.s32.totalorder %s1348_s27, 2 }
   0xc   : > { %p1436_p8 = por %p196_p7, %p195_p4  ;;  %230 = sbr.rel (%p1064_p9) target bundleno = 29 (0x1d), region = 40 }
  0x11   : > { %233 = sbr.rel (!%p36_p5) target bundleno = 29 (0x1d), region = 44  ;;  %s235_s13 = sand.u32 (%p36_p5), 1, %s1344_s26  }
  0x12   : > { %s1066_s14 = sshll.u32 (%p36_p5), %s1348_s27, 2  ;;  %s1065_s15 = sshll.u32 (%p36_p5), %s235_s13, 5 }
  0x13   : > { %s239_s18 = scalar_lea.vmem (%p36_p5), %s1653_s0, %s1066_s14  ;;  %s237_s19 = scalar_lea.vmem (%p36_p5), [#allocation2], %s1065_s15 }
  0x14   : > { %v256_v0 = vld [vmem:[%s239_s18] sm:$0xf] (%p36_p5)  ;;  %v258_v1 = vld [vmem:[%s239_s18 + $0x8] sm:$0xf] (%p36_p5)  ;;  %v260_v2 = vld [vmem:[%s239_s18 + $0x10] sm:$0xf] (%p36_p5) }
  0x15   : > { %257 = vst [vmem:[%s237_s19] sm:$0xf] (%p36_p5), %v256_v0  ;;  %v262_v3 = vld [vmem:[%s239_s18 + $0x18] sm:$0xf] (%p36_p5)  ;;  %v264_v4 = vld [vmem:[%s239_s18 + $0x20] sm:$0xf] (%p36_p5) }
  0x16   : > { %259 = vst [vmem:[%s237_s19 + $0x4] sm:$0xf] %v258_v1  ;;  %v266_v5 = vld [vmem:[%s239_s18 + $0x28] sm:$0xf]  ;;  %v268_v6 = vld [vmem:[%s239_s18 + $0x30] sm:$0xf] }
  0x17   : > { %261 = vst [vmem:[%s237_s19 + $0x8] sm:$0xf] %v260_v2  ;;  %v270_v7 = vld [vmem:[%s239_s18 + $0x38] sm:$0xf] }
  0x18   : > { %263 = vst [vmem:[%s237_s19 + $0xc] sm:$0xf] %v262_v3 }
  0x19   : > { %265 = vst [vmem:[%s237_s19 + $0x10] sm:$0xf] %v264_v4 }
  0x1a   : > { %267 = vst [vmem:[%s237_s19 + $0x14] sm:$0xf] %v266_v5 }
  0x1b   : > { %269 = vst [vmem:[%s237_s19 + $0x18] sm:$0xf] %v268_v6 }
  0x1c   : > { %271 = vst [vmem:[%s237_s19 + $0x1c] sm:$0xf] %v270_v7 }
  0x1d PF: > { %p1067_p10 = scmp.ge.s32.totalorder %s1348_s27, 1  ;;  %p310_p11 = scmp.lt.s32.totalorder %s1348_s27, 3 }
  0x1f   : > { %p311_p12 = pnand %p1067_p10, %p310_p11 }
  0x20   : > { %s317_s29 = sand.u32 (!%p311_p12), 1, %s1340_s25   ;;  %s1207_s21 = sshll.u32 (!%p311_p12), %s1061_s28, 3 }
  0x21   : > { %314 = sbr.rel (%p311_p12) target bundleno = 1439 (0x59f), region = 85  ;;  %s1459_s8 = sshll.u32 (!%p311_p12), %s317_s29, 5 }
  0x22   : > { %s319_s9 = scalar_lea.vmem (!%p311_p12), [#allocation2], %s1459_s8  ;;  %s990_s13 = scalar_lea.hbm (!%p311_p12), %s1660_s7, %s1207_s21 }
  0x23   : > { %s1620_s15 = sshll.u32 (!%p311_p12), %s990_s13, 4  ;;  %s980_s28 = scalar_lea.sflag (!%p311_p12), [#allocation4], %s317_s29  ;;  %s994_s15 = int_to_ptr.hbm [resolvable:$true] %s1620_s15 }
  0x24   : > { %s1300_s16 = sshra.s32 (!%p311_p12), %s994_s15, 4  ;;  %s1306_s19 = scalar_lea.hbm (!%p311_p12), %s1660_s7, 64  ;;  %s1301_s16 = int_to_ptr.hbm [resolvable:$true] %s1300_s16 }
  0x25   : > { %p1307_p2 = scmp.lt.s32.totalorder (!%p311_p12), %s1301_s16, %s1660_s7 }
  0x26   : > { %v363_v8 = vld [vmem:[%s1655_s2 + $0x10] sm:$0xff]  ;;  %v361_v9 = vld [vmem:[%s1655_s2] sm:$0xff]  ;;  %v1350_v10 = vmov 0   ;;  %v1215_v11 = vld [vmem:[%s319_s9 + $0x18] sm:$0xff]  ;;  %vm419_vm0 = vcmask 523264   ;;  %vm489_vm1 = vcmask 261120  }
  0x27   : > { %1274 = vset.pattern.permute.xlu1 %v1350_v10  ;;  %1273 = vset.pattern.permute.xlu0 %v1350_v10  ;;  %v1214_v12 = vld [vmem:[%s319_s9 + $0x10] sm:$0xff]  ;;  %v364_v13 = vld [vmem:[%s1655_s2 + $0x18] sm:$0xff]  ;;  %v362_v14 = vld [vmem:[%s1655_s2 + $0x8] sm:$0xff] }
  0x28   : > { %377 = vperm.xlu0 %1273, %v363_v8   ;;  %367 = vperm.xlu1 %1274, %v361_v9   ;;  %v1213_v15 = vld [vmem:[%s319_s9 + $0x8] sm:$0xff]  ;;  %v1212_v16 = vld [vmem:[%s319_s9] sm:$0xff]  ;;  %v1113_v20 = vld [vmem:[%s1657_s4 + $0x38] sm:$0xff]  ;;  %s347_s9 = scalar_lea.vmem [#allocation3], %s1459_s8  ;;  %s1302_s8 = scalar_lea.hbm %s1301_s16, 32 }
  0x29   : > { %1275 = vset.pattern.permute.xlu2 %v1350_v10  ;;  %430 = vmatpush.bf16.msra.mxu0 %v1215_v11  ;;  %v455_v17 = vld [vmem:[%s1657_s4] sm:$0xff]  ;;  %v456_v18 = vld [vmem:[%s1657_s4 + $0x8] sm:$0xff]  ;;  %v1130_v22 = vld [vmem:[%s1657_s4 + $0x50] sm:$0xff]  ;;  %s991_s14 = sshll.u32 %s347_s9, 4  ;;  %p1303_p13 = scmp.ne.s32.totalorder %s1301_s16, %s1302_s8  ;;  %s992_s14 = int_to_ptr.vmem [resolvable:$true] %s991_s14 }
  0x2a   : > { %v1210_v19 = vld [vmem:[%s1654_s1] sm:$0xff]  ;;  %v1131_v23 = vld [vmem:[%s1657_s4 + $0x58] sm:$0xff]  ;;  %v1211_v24 = vld [vmem:[%s1654_s1 + $0x8] sm:$0xff]  ;;  %p1308_p3 = scmp.lt.s32.totalorder %s1306_s19, %s1302_s8 }
  0x2b   : > { %v1110_v21 = vld [vmem:[%s1657_s4 + $0x20] sm:$0xff]  ;;  %v1129_v25 = vld [vmem:[%s1657_s4 + $0x48] sm:$0xff]  ;;  %v1148_v26 = vld [vmem:[%s1657_s4 + $0x70] sm:$0xff]  ;;  %p1304_p0 = pnand %p1303_p13, %p1432_p6 }
  0x2c   : > { %v1146_v27 = vld [vmem:[%s1657_s4 + $0x60] sm:$0xff]  ;;  %v1147_v28 = vld [vmem:[%s1657_s4 + $0x68] sm:$0xff]  ;;  %v1167_v29 = vld [vmem:[%s1657_s4 + $0x98] sm:$0xff]  ;;  %p1309_p4 = por %p1308_p3, %p1307_p2 }
  0x2d   : > { %431 = vmatpush.bf16.msra.mxu0 %v1214_v12  ;;  %v1164_v30 = vld [vmem:[%s1657_s4 + $0x80] sm:$0xff]  ;;  %v1184_v31 = vld [vmem:[%s1657_s4 + $0xb0] sm:$0xff]  ;;  %v1185_v32 = vld [vmem:[%s1657_s4 + $0xb8] sm:$0xff]  ;;  %p1305_p1 = pneg %p1304_p0 }
  0x2e   : > { %v1183_v33 = vld [vmem:[%s1657_s4 + $0xa8] sm:$0xff]  ;;  %v880_v34 = vld [vmem:[%s1659_s6] sm:$0xff]  ;;  %v882_v35 = vld [vmem:[%s1659_s6 + $0x10] sm:$0xff] }
  0x2f   : > { %v883_v36 = vld [vmem:[%s1659_s6 + $0x18] sm:$0xff]  ;;  %v457_v37 = vld [vmem:[%s1657_s4 + $0x10] sm:$0xff]  ;;  %v1111_v41 = vld [vmem:[%s1657_s4 + $0x28] sm:$0xff]  ;;  %p1310_p5 = pnand %p1309_p4, %p1305_p1 }
  0x30   : > { %382 = vperm.xlu0 %1273, %v364_v13   ;;  %372 = vperm.xlu1 %1274, %v362_v14   ;;  %v458_v38 = vld [vmem:[%s1657_s4 + $0x18] sm:$0xff]  ;;  %v1112_v39 = vld [vmem:[%s1657_s4 + $0x30] sm:$0xff]  ;;  %v1128_v45 = vld [vmem:[%s1657_s4 + $0x40] sm:$0xff] }
  0x31   : > { %432 = vmatpush.bf16.msra.mxu0 %v1213_v15  ;;  %471 = vperm.xlu2 %1275, %v457_v37   ;;  %v1149_v47 = vld [vmem:[%s1657_s4 + $0x78] sm:$0xff]  ;;  %v1166_v59 = vld [vmem:[%s1657_s4 + $0x90] sm:$0xff]  ;;  %v1216_v62 = vld [vmem:[%s1656_s3] sm:$0xff] }
  0x32   : > { %v1165_v63 = vld [vmem:[%s1657_s4 + $0x88] sm:$0xff]  ;;  %v1182_v0 = vld [vmem:[%s1657_s4 + $0xa0] sm:$0xff] }
  0x33   : > { %v1217_v1 = vld [vmem:[%s1656_s3 + $0x8] sm:$0xff] }
  0x34   : > { %v881_v2 = vld [vmem:[%s1659_s6 + $0x8] sm:$0xff] }
  0x35   : > { %433 = vmatpush.bf16.msra.mxu0 %v1212_v16 }
  0x38   : > { %461 = vperm.xlu0 %1273, %v455_v17   ;;  %466 = vperm.xlu1 %1274, %v456_v18  }
  0x39   : > { %1094 = vmatmul.msk.bf16.vlgmr.msra.gmra.mxu0 %vm419_vm0, %v1210_v19  ;;  %476 = vperm.xlu2 %1275, %v458_v38  }
  0x40   : > { %548 = vperm.xlu0 %1273, %v1113_v20   ;;  %533 = vperm.xlu1 %1274, %v1110_v21   ;;  %v1218_v21 = vld [vmem:[%s1656_s3 + $0x10] sm:$0xff] }
  0x41   : > { %543 = vperm.xlu2 %1275, %v1112_v39  }
  0x48   : > { %614 = vperm.xlu0 %1273, %v1130_v22   ;;  %619 = vperm.xlu1 %1274, %v1131_v23   ;;  %v1219_v22 = vld [vmem:[%s1656_s3 + $0x18] sm:$0xff] }
  0x49   : > { %1095 = vmatmul.msk.bf16.gmra.mxu0 %vm419_vm0, %v1211_v24  ;;  %538 = vperm.xlu2 %1275, %v1111_v41   ;;  %v1220_v41 = vld [vmem:[%s1656_s3 + $0x20] sm:$0xff] }
  0x50   : > { %609 = vperm.xlu0 %1273, %v1129_v25   ;;  %685 = vperm.xlu1 %1274, %v1148_v26  }
  0x51   : > { %604 = vperm.xlu2 %1275, %v1128_v45  }
  0x58   : > { %675 = vperm.xlu0 %1273, %v1146_v27   ;;  %680 = vperm.xlu1 %1274, %v1147_v28  }
  0x59   : > { %690 = vperm.xlu2 %1275, %v1149_v47  }
  0x60   : > { %761 = vperm.xlu0 %1273, %v1167_v29   ;;  %746 = vperm.xlu1 %1274, %v1164_v30  }
  0x61   : > { %756 = vperm.xlu2 %1275, %v1166_v59  }
  0x68   : > { %827 = vperm.xlu0 %1273, %v1184_v31   ;;  %832 = vperm.xlu1 %1274, %v1185_v32  }
  0x69   : > { %751 = vperm.xlu2 %1275, %v1165_v63  }
  0x70   : > { %822 = vperm.xlu0 %1273, %v1183_v33   ;;  %886 = vperm.xlu1 %1274, %v880_v34  }
  0x71   : > { %817 = vperm.xlu2 %1275, %v1182_v0  }
  0x78   : > { %896 = vperm.xlu0 %1273, %v882_v35   ;;  %901 = vperm.xlu1 %1274, %v883_v36  }
  0x79   : > { %891 = vperm.xlu2 %1275, %v881_v2  }
  0x8b   : > { %v472_v5 = vpop.permute.xlu2 %471 }
  0x93   : > { %v477_v9 = vpop.permute.xlu2 %476 }
  0x9a   : > { %v378_v43 = vpop.permute.xlu0 %377  ;;  %v368_v44 = vpop.permute.xlu1 %367 }
  0x9b   : > { %v544_v25 = vpop.permute.xlu2 %543 }
  0xa2   : > { %v383_v48 = vpop.permute.xlu0 %382  ;;  %v373_v50 = vpop.permute.xlu1 %372 }
  0xa3   : > { %v539_v29 = vpop.permute.xlu2 %538 }
  0xaa   : > { %v467_v7 = vpop.permute.xlu1 %466  ;;  %v462_v13 = vpop.permute.xlu0 %461 }
  0xb2   : > { %v549_v27 = vpop.permute.xlu0 %548  ;;  %v534_v33 = vpop.permute.xlu1 %533 }
  0xb6   : > { %v435_v40 = vpop.f32.mrf.mxu0 }
  0xb7   : > { %v436_v54 = vadd.f32 %v435_v40, %v368_v44 }
  0xb9   : > { %v445_v60 = vmax.f32 %v436_v54, 0.0 }
  0xba   : > { %v615_v45 = vpop.permute.xlu0 %614  ;;  %v620_v47 = vpop.permute.xlu1 %619 }
  0xbe   : > { %v437_v42 = vpop.f32.mrf.mxu0 }
  0xbf   : > { %v438_v52 = vadd.f32 %v437_v42, %v373_v50  ;;  %v1221_v42 = vld [vmem:[%s1656_s3 + $0x28] sm:$0xff] }
  0xc1   : > { %v446_v57 = vmax.f32 %v438_v52, 0.0 }
  0xc3   : > { %v453_v61 = vpack.c.bf16 %v446_v57, %v445_v60 }
  0xc6   : > { %v440_v46 = vpop.f32.mrf.mxu0 }
  0xc7   : > { %v441_v49 = vadd.f32 %v440_v46, %v378_v43 }
  0xc9   : > { %v447_v55 = vmax.f32 %v441_v49, 0.0  ;;  %v610_v49 = vpop.permute.xlu0 %609 }
  0xce   : > { %v442_v51 = vpop.f32.mrf.mxu0 }
  0xcf   : > { %v443_v53 = vadd.f32 %v442_v51, %v383_v48 }
  0xd1   : > { %v448_v56 = vmax.f32 %v443_v53, 0.0  ;;  %v605_v53 = vpop.permute.xlu2 %604 }
  0xd3   : > { %v454_v58 = vpack.c.bf16 %v448_v56, %v447_v55 }
  0xd5   : > { %502 = vmatpush.bf16.msra.mxu1 %v454_v58 }
  0xd9   : > { %503 = vmatpush.bf16.msra.mxu1 %v453_v61  ;;  %v1222_v61 = vld [vmem:[%s1656_s3 + $0x30] sm:$0xff] }
  0xdc   : > { %1104 = vmatmul.msk.bf16.vlgmr.msra.gmra.mxu1 %vm489_vm1, %v1216_v62  ;;  %v1223_v62 = vld [vmem:[%s1656_s3 + $0x38] sm:$0xff] }
  0xec   : > { %1105 = vmatmul.msk.bf16.gmra.mxu1 %vm489_vm1, %v1217_v1  ;;  %v686_v1 = vpop.permute.xlu1 %685 }
 0x159   : > { %v505_v3 = vpop.f32.mrf.mxu1 }
 0x15a   : > { %v506_v14 = vadd.f32 %v505_v3, %v462_v13  ;;  %v681_v3 = vpop.permute.xlu1 %680 }
 0x15c   : > { %v515_v19 = vmax.f32 %v506_v14, 0.0 }
 0x161   : > { %v507_v4 = vpop.f32.mrf.mxu1 }
 0x162   : > { %v508_v11 = vadd.f32 %v507_v4, %v467_v7 }
 0x164   : > { %v516_v17 = vmax.f32 %v508_v11, 0.0 }
 0x166   : > { %v524_v20 = vpack.c.bf16 %v516_v17, %v515_v19  ;;  %v1224_v17 = vld [vmem:[%s1656_s3 + $0x40] sm:$0xff] }
 0x169   : > { %v510_v6 = vpop.f32.mrf.mxu1 }
 0x16a   : > { %v511_v8 = vadd.f32 %v510_v6, %v472_v5  ;;  %v691_v5 = vpop.permute.xlu2 %690 }
 0x16c   : > { %v517_v15 = vmax.f32 %v511_v8, 0.0 }
 0x171   : > { %v512_v10 = vpop.f32.mrf.mxu1 }
 0x172   : > { %v513_v12 = vadd.f32 %v512_v10, %v477_v9  ;;  %v676_v9 = vpop.permute.xlu0 %675 }
 0x174   : > { %v518_v16 = vmax.f32 %v513_v12, 0.0 }
 0x176   : > { %v525_v18 = vpack.c.bf16 %v518_v16, %v517_v15 }
 0x178   : > { %573 = vmatpush.bf16.msra.mxu2 %v525_v18  ;;  %v1225_v18 = vld [vmem:[%s1656_s3 + $0x48] sm:$0xff] }
 0x17c   : > { %574 = vmatpush.bf16.msra.mxu2 %v524_v20 }
 0x17f   : > { %1122 = vmatmul.msk.bf16.vlgmr.msra.gmra.mxu2 %vm489_vm1, %v1218_v21  ;;  %v757_v21 = vpop.permute.xlu2 %756 }
 0x18f   : > { %1123 = vmatmul.msk.bf16.gmra.mxu2 %vm489_vm1, %v1219_v22 }
 0x202   : > { %v576_v23 = vpop.f32.mrf.mxu2 }
 0x203   : > { %v577_v34 = vadd.f32 %v576_v23, %v534_v33  ;;  %v762_v23 = vpop.permute.xlu0 %761 }
 0x205   : > { %v586_v39 = vmax.f32 %v577_v34, 0.0 }
 0x20a   : > { %v578_v24 = vpop.f32.mrf.mxu2 }
 0x20b   : > { %v579_v31 = vadd.f32 %v578_v24, %v539_v29  ;;  %v747_v29 = vpop.permute.xlu1 %746 }
 0x20d   : > { %v587_v37 = vmax.f32 %v579_v31, 0.0 }
 0x20f   : > { %v595_v40 = vpack.c.bf16 %v587_v37, %v586_v39  ;;  %v1226_v37 = vld [vmem:[%s1656_s3 + $0x50] sm:$0xff] }
 0x212   : > { %v581_v26 = vpop.f32.mrf.mxu2 }
 0x213   : > { %v582_v28 = vadd.f32 %v581_v26, %v544_v25  ;;  %v752_v25 = vpop.permute.xlu2 %751 }
 0x215   : > { %v588_v35 = vmax.f32 %v582_v28, 0.0 }
 0x21a   : > { %v583_v30 = vpop.f32.mrf.mxu2 }
 0x21b   : > { %v584_v32 = vadd.f32 %v583_v30, %v549_v27 }
 0x21d   : > { %v589_v36 = vmax.f32 %v584_v32, 0.0 }
 0x21f   : > { %v596_v38 = vpack.c.bf16 %v589_v36, %v588_v35 }
 0x221   : > { %644 = vmatpush.bf16.msra.mxu3 %v596_v38  ;;  %v1227_v38 = vld [vmem:[%s1656_s3 + $0x58] sm:$0xff] }
 0x225   : > { %645 = vmatpush.bf16.msra.mxu3 %v595_v40 }
 0x228   : > { %1140 = vmatmul.msk.bf16.vlgmr.msra.gmra.mxu3 %vm489_vm1, %v1220_v41  ;;  %v828_v41 = vpop.permute.xlu0 %827 }
 0x238   : > { %1141 = vmatmul.msk.bf16.gmra.mxu3 %vm489_vm1, %v1221_v42 }
 0x2ab   : > { %v647_v43 = vpop.f32.mrf.mxu3 }
 0x2ac   : > { %v648_v54 = vadd.f32 %v647_v43, %v605_v53  ;;  %v833_v43 = vpop.permute.xlu1 %832 }
 0x2ae   : > { %v657_v59 = vmax.f32 %v648_v54, 0.0 }
 0x2b3   : > { %v649_v44 = vpop.f32.mrf.mxu3 }
 0x2b4   : > { %v650_v51 = vadd.f32 %v649_v44, %v610_v49  ;;  %v818_v49 = vpop.permute.xlu2 %817 }
 0x2b6   : > { %v658_v57 = vmax.f32 %v650_v51, 0.0 }
 0x2b8   : > { %v666_v60 = vpack.c.bf16 %v658_v57, %v657_v59  ;;  %v1228_v57 = vld [vmem:[%s1658_s5] sm:$0xff] }
 0x2bb   : > { %v652_v46 = vpop.f32.mrf.mxu3 }
 0x2bc   : > { %v653_v48 = vadd.f32 %v652_v46, %v615_v45  ;;  %v823_v45 = vpop.permute.xlu0 %822 }
 0x2be   : > { %v659_v55 = vmax.f32 %v653_v48, 0.0 }
 0x2c3   : > { %v654_v50 = vpop.f32.mrf.mxu3 }
 0x2c4   : > { %v655_v52 = vadd.f32 %v654_v50, %v620_v47 }
 0x2c6   : > { %v660_v56 = vmax.f32 %v655_v52, 0.0 }
 0x2c8   : > { %v667_v58 = vpack.c.bf16 %v660_v56, %v659_v55 }
 0x2ca   : > { %715 = vmatpush.bf16.msrb.mxu1 %v667_v58  ;;  %v1229_v58 = vld [vmem:[%s1658_s5 + $0x8] sm:$0xff] }
 0x2ce   : > { %716 = vmatpush.bf16.msrb.mxu1 %v666_v60 }
 0x2d1   : > { %1158 = vmatmul.msk.bf16.vlgmr.msrb.gmra.mxu1 %vm489_vm1, %v1222_v61  ;;  %v887_v61 = vpop.permute.xlu1 %886 }
 0x2e1   : > { %1159 = vmatmul.msk.bf16.gmra.mxu1 %vm489_vm1, %v1223_v62 }
 0x34e   : > { %v718_v63 = vpop.f32.mrf.mxu1 }
 0x34f   : > { %v719_v10 = vadd.f32 %v718_v63, %v676_v9  ;;  %v892_v63 = vpop.permute.xlu2 %891 }
 0x351   : > { %v728_v15 = vmax.f32 %v719_v10, 0.0 }
 0x356   : > { %v720_v0 = vpop.f32.mrf.mxu1 }
 0x357   : > { %v721_v7 = vadd.f32 %v720_v0, %v681_v3  ;;  %v897_v0 = vpop.permute.xlu0 %896 }
 0x359   : > { %v729_v13 = vmax.f32 %v721_v7, 0.0 }
 0x35b   : > { %v737_v16 = vpack.c.bf16 %v729_v13, %v728_v15 }
 0x35e   : > { %v723_v2 = vpop.f32.mrf.mxu1 }
 0x35f   : > { %v724_v4 = vadd.f32 %v723_v2, %v686_v1  ;;  %v902_v2 = vpop.permute.xlu1 %901 }
 0x361   : > { %v730_v11 = vmax.f32 %v724_v4, 0.0 }
 0x366   : > { %v725_v6 = vpop.f32.mrf.mxu1 }
 0x367   : > { %v726_v8 = vadd.f32 %v725_v6, %v691_v5 }
 0x369   : > { %v731_v12 = vmax.f32 %v726_v8, 0.0 }
 0x36b   : > { %v738_v14 = vpack.c.bf16 %v731_v12, %v730_v11 }
 0x36d   : > { %786 = vmatpush.bf16.msrb.mxu2 %v738_v14 }
 0x371   : > { %787 = vmatpush.bf16.msrb.mxu2 %v737_v16 }
 0x374   : > { %1176 = vmatmul.msk.bf16.vlgmr.msrb.gmra.mxu2 %vm489_vm1, %v1224_v17 }
 0x384   : > { %1177 = vmatmul.msk.bf16.gmra.mxu2 %vm489_vm1, %v1225_v18 }
 0x3f7   : > { %v789_v19 = vpop.f32.mrf.mxu2 }
 0x3f8   : > { %v790_v30 = vadd.f32 %v789_v19, %v747_v29 }
 0x3fa   : > { %v799_v35 = vmax.f32 %v790_v30, 0.0 }
 0x3ff   : > { %v791_v20 = vpop.f32.mrf.mxu2 }
 0x400   : > { %v792_v27 = vadd.f32 %v791_v20, %v752_v25 }
 0x402   : > { %v800_v33 = vmax.f32 %v792_v27, 0.0 }
 0x404   : > { %v808_v36 = vpack.c.bf16 %v800_v33, %v799_v35 }
 0x407   : > { %v794_v22 = vpop.f32.mrf.mxu2 }
 0x408   : > { %v795_v24 = vadd.f32 %v794_v22, %v757_v21 }
 0x40a   : > { %v801_v31 = vmax.f32 %v795_v24, 0.0 }
 0x40f   : > { %v796_v26 = vpop.f32.mrf.mxu2 }
 0x410   : > { %v797_v28 = vadd.f32 %v796_v26, %v762_v23 }
 0x412   : > { %v802_v32 = vmax.f32 %v797_v28, 0.0 }
 0x414   : > { %v809_v34 = vpack.c.bf16 %v802_v32, %v801_v31 }
 0x416   : > { %857 = vmatpush.bf16.msrb.mxu3 %v809_v34 }
 0x41a   : > { %858 = vmatpush.bf16.msrb.mxu3 %v808_v36 }
 0x41d   : > { %1194 = vmatmul.msk.bf16.vlgmr.msrb.gmra.mxu3 %vm489_vm1, %v1226_v37 }
 0x42d   : > { %1195 = vmatmul.msk.bf16.gmra.mxu3 %vm489_vm1, %v1227_v38 }
 0x4a0   : > { %v860_v39 = vpop.f32.mrf.mxu3 }
 0x4a1   : > { %v861_v50 = vadd.f32 %v860_v39, %v818_v49 }
 0x4a3   : > { %v870_v55 = vmax.f32 %v861_v50, 0.0 }
 0x4a8   : > { %v862_v40 = vpop.f32.mrf.mxu3 }
 0x4a9   : > { %v863_v47 = vadd.f32 %v862_v40, %v823_v45 }
 0x4ab   : > { %v871_v53 = vmax.f32 %v863_v47, 0.0 }
 0x4ad   : > { %v878_v56 = vpack.c.bf16 %v871_v53, %v870_v55 }
 0x4b0   : > { %v865_v42 = vpop.f32.mrf.mxu3 }
 0x4b1   : > { %v866_v44 = vadd.f32 %v865_v42, %v828_v41 }
 0x4b3   : > { %v872_v51 = vmax.f32 %v866_v44, 0.0 }
 0x4b8   : > { %v867_v46 = vpop.f32.mrf.mxu3 }
 0x4b9   : > { %v868_v48 = vadd.f32 %v867_v46, %v833_v43 }
 0x4bb   : > { %v873_v52 = vmax.f32 %v868_v48, 0.0 }
 0x4bd   : > { %v879_v54 = vpack.c.bf16 %v873_v52, %v872_v51 }
 0x4bf   : > { %926 = vmatpush.bf16.msrb.mxu0 %v879_v54 }
 0x4c3   : > { %927 = vmatpush.bf16.msrb.mxu0 %v878_v56 }
 0x4c6   : > { %1204 = vmatmul.msk.bf16.vlgmr.msrb.gmra.mxu0 %vm489_vm1, %v1228_v57 }
 0x4d6   : > { %1205 = vmatmul.msk.bf16.gmra.mxu0 %vm489_vm1, %v1229_v58 }
 0x543   : > { %v929_v59 = vpop.f32.mrf.mxu0 }
 0x544   : > { %v930_v4 = vadd.f32 %v929_v59, %v887_v61 }
 0x54b   : > { %v931_v60 = vpop.f32.mrf.mxu0 }
 0x54c   : > { %v932_v1 = vadd.f32 %v931_v60, %v892_v63 }
 0x54e   : > { %v939_v7 = vmax.f32 %v930_v4, %v932_v1 }
 0x553   : > { %v934_v62 = vpop.f32.mrf.mxu0 }
 0x554   : > { %v935_v5 = vadd.f32 %v934_v62, %v897_v0 }
 0x55b   : > { %v936_v3 = vpop.f32.mrf.mxu0 }
 0x55c   : > { %v937_v6 = vadd.f32 %v936_v3, %v902_v2 }
 0x55e   : > { %v940_v8 = vmax.f32 %v935_v5, %v937_v6 }
 0x560   : > { %v941_v9 = vmax.f32 %v939_v7, %v940_v8 }
 0x562   : > { %v942_v10 = vrot.slane %v941_v9, 4 }
 0x564   : > { %v943_v11 = vmax.f32 %v941_v9, %v942_v10 }
 0x566   : > { %v944_v12 = vrot.slane %v943_v11, 2 }
 0x568   : > { %v945_v13 = vmax.f32 %v943_v11, %v944_v12 }
 0x56a   : > { %v946_v14 = vrot.slane %v945_v13, 1 }
 0x56c   : > { %v947_v15 = vmax.f32 %v945_v13, %v946_v14 }
 0x56e   : > { %v948_v16 = vsub.f32 %v930_v4, %v947_v15  ;;  %v949_v17 = vsub.f32 %v932_v1, %v947_v15  ;;  %v950_v18 = vsub.f32 %v935_v5, %v947_v15  ;;  %v951_v19 = vsub.f32 %v937_v6, %v947_v15 }
 0x570   : > { %v952_v20 = vmul.f32 1.442695, %v948_v16  ;;  %v954_v21 = vmul.f32 1.442695, %v949_v17  ;;  %v956_v22 = vmul.f32 1.442695, %v950_v18 }
 0x571   : > { %v958_v23 = vmul.f32 1.442695, %v951_v19 }
 0x572   : > { %1276 = vpow2.f32 %v952_v20 }
 0x573   : > { %1278 = vpow2.f32 %v954_v21 }
 0x574   : > { %1280 = vpow2.f32 %v956_v22 }
 0x575   : > { %1282 = vpow2.f32 %v958_v23 }
 0x578   : > { %v1277_v24 = vpop.eup %1276 }
 0x579   : > { %v1279_v25 = vpop.eup %1278 }
 0x57a   : > { %v960_v26 = vadd.f32 %v1279_v25, %v1277_v24  ;;  %v1281_v27 = vpop.eup %1280 }
 0x57b   : > { %v1283_v29 = vpop.eup %1282 }
 0x57c   : > { %v961_v28 = vadd.f32 %v1281_v27, %v960_v26 }
 0x57e   : > { %v962_v30 = vadd.f32 %v1283_v29, %v961_v28 }
 0x580   : > { %v963_v31 = vrot.slane %v962_v30, 4 }
 0x582   : > { %v964_v32 = vadd.f32 %v963_v31, %v962_v30 }
 0x584   : > { %v965_v33 = vrot.slane %v964_v32, 2 }
 0x586   : > { %v966_v34 = vadd.f32 %v965_v33, %v964_v32 }
 0x588   : > { %v967_v35 = vrot.slane %v966_v34, 1 }
 0x58a   : > { %v968_v36 = vadd.f32 %v967_v35, %v966_v34 }
 0x58c   : > { %1284 = vlog2.f32 %v968_v36 }
 0x592   : > { %v1285_v37 = vpop.eup %1284 }
 0x593   : > { %v970_v38 = vmul.f32 0.6931472, %v1285_v37 }
 0x595   : > { %v971_v39 = vsub.f32 %v948_v16, %v970_v38  ;;  %v972_v40 = vsub.f32 %v949_v17, %v970_v38  ;;  %v973_v41 = vsub.f32 %v950_v18, %v970_v38  ;;  %v974_v42 = vsub.f32 %v951_v19, %v970_v38 }
 0x597   : > { %975 = vst [vmem:[%s347_s9] sm:$0xff] %v971_v39 }
 0x598   : > { %976 = vst [vmem:[%s347_s9 + $0x8] sm:$0xff] %v972_v40 }
 0x599   : > { %977 = vst [vmem:[%s347_s9 + $0x10] sm:$0xff] %v973_v41 }
 0x59a   : > { %978 = vst [vmem:[%s347_s9 + $0x18] sm:$0xff] %v974_v42 }
 0x59b   : > { %1313 = shalt.err (!%p1310_p5)
}
 0x59c   : > { %s1351_s29 = smov 128   ;;  %s1352_s22 = smov 256  }
 0x59d   : > { %s1353_s23 = smov 8  }
 0x59e   : > { %1230 = dma.vmem_to_hbm [thread:$0]  (%p1432_p6), %s992_s14, 512, %s994_s15, %s980_s28, %s1351_s29, %s1352_s22, %s1353_s23  }
 0x59f PF: > { %s1008_s13 = sand.u32 1, %s1336_s24   ;;  %p1233_p7 = pnand %p1064_p9, %p1436_p8 }
 0x5a0   : > { %s1009_s9 = scalar_lea.sflag [#allocation4], %s1008_s13 }
 0x5a1   : > { %p1234_p10 = pneg %p1233_p7 }
 0x5a3   : > { %1331 = dma.done.wait (%p1234_p10), %s1009_s9, 512  }
 0x5a4   : > { %1333 = vsyncadd (%p1234_p10), %s1009_s9, 4294966784  ;;  %p17_p11 = scmp.ge.s32.totalorder %s1417_s30, 4   ;;  %s1663_s24 = smov %s1340_s25 }
 0x5a5   : > { %s1664_s25 = smov %s1344_s26  ;;  %s1665_s26 = smov %s1430_s10 }
 0x5a6   : > { %s1666_s27 = smov %s1417_s30  ;;  %19 = sbr.rel (!%p17_p11) target bundleno = 3 (0x3), region = 139 }
 0x5ab   :  { %1015 = vsyncpa [#allocation4], 1 }
 0x5ac   :  { %1017 = vsyncpa [#allocation4 + $0x1], 1 }

</bundles_post_ra>
